<compile_context>
chip_gen: v6e
topology: v6e:2x2x1
jax: 0.10.0
libtpu: 0.0.40
codegen_flags: <defaults>
</compile_context>

<pallas_src>
import functools

import jax
import jax.numpy as jnp
from jax.experimental import pallas as pl
from jax.experimental.pallas import tpu as pltpu


CONV4_K = 1080                      # kernel size of nn.Conv1d(1, 1, 1080, padding='same')
CHANS = ((16, 1), (8, 16), (1, 8))  # (Cout, Cin) for conv1..conv3


def _round_up(x, m):
    return ((x + m - 1) // m) * m


# ----------------------------- Packed parameter slab layout ---------------------------


def slab_layout(N):
    """Static row offsets of every weight/bias block in the packed parameter slab."""
    off = {}
    row = 0
    for li, (co, _ci) in enumerate(CHANS, 1):
        for t in range(3):
            off[f"w{li}t{t}"] = row          # kron(I_N, w[t]) block: (N*co, N*ci)
            row = _round_up(row + N * co, 8)
    for li, (co, _ci) in enumerate(CHANS, 1):
        off[f"b{li}"] = row                  # tiled bias column: (N*co, 1)
        row = _round_up(row + N * co, 8)
    off["b4"] = row                          # scalar bias of conv4: (1, 1)
    row = _round_up(row + 1, 8)
    cols = _round_up(max(N * ci for _co, ci in CHANS), 128)
    return off, row, cols


def conv4_toeplitz(w4, L):
    # out[l] = sum_k w4[k] * x_pad[l + k], left pad = (K-1)//2 (PyTorch 'same', even K).
    # As matmul: out = x @ T with T[m, l] = w4[m - l + left].
    K = w4.shape[0]
    left = (K - 1) // 2
    m = jnp.arange(L)[:, None]
    l = jnp.arange(L)[None, :]
    k = m - l + left
    valid = (k >= 0) & (k < K)
    return jnp.where(valid, w4[jnp.clip(k, 0, K - 1)], 0.0).astype(jnp.float32)


def prepare_params(params, N, L):
    """One-time parameter preprocessing (hoisted off the per-call hot path)."""
    off, rows, cols = slab_layout(N)
    eye = jnp.eye(N, dtype=jnp.float32)
    slab = jnp.zeros((rows, cols), jnp.float32)
    for li, (wname, bname) in enumerate((("w1", "b1"), ("w2", "b2"), ("w3", "b3")), 1):
        w = params[wname].astype(jnp.float32)                # (3, Cout, Cin)
        for t in range(3):
            blk = jnp.kron(eye, w[t])                        # (N*Cout, N*Cin)
            r = off[f"w{li}t{t}"]
            slab = slab.at[r:r + blk.shape[0], :blk.shape[1]].set(blk)
        b = jnp.tile(params[bname].astype(jnp.float32), (N, 1))  # (N*Cout, 1)
        r = off[f"b{li}"]
        slab = slab.at[r:r + b.shape[0], :1].set(b)
    slab = slab.at[off["b4"]:off["b4"] + 1, :1].set(params["b4"].astype(jnp.float32))
    t4 = conv4_toeplitz(params["w4"].astype(jnp.float32), L)
    return slab, t4


# ----------------------------- Pallas kernel ------------------------------------------


def cnn_kernel(x_ref, slab_ref, t4_ref, o_ref, *, N, off):
    f32 = jnp.float32
    _, L = x_ref.shape

    # One-lane masks for the zero 'same' padding of the k=3 convs (only (1, L) each).
    lane = jax.lax.broadcasted_iota(jnp.int32, (1, L), 1)
    m_not_first = (lane > 0).astype(f32)       # zero the wrapped lane of roll(+1)
    m_not_last = (lane < L - 1).astype(f32)    # zero the wrapped lane of roll(-1)

    def conv_k3(a, li, cout, cin):
        # a: (N*cin, L)  [batch x channel on sublanes, sequence on lanes]
        rows, cols = N * cout, N * cin
        a_prev = pltpu.roll(a, 1, axis=1) * m_not_first       # a[:, l-1], 0 at l=0
        a_next = pltpu.roll(a, L - 1, axis=1) * m_not_last    # a[:, l+1], 0 at l=L-1

        def w(t):
            r = off[f"w{li}t{t}"]
            return slab_ref[r:r + rows, 0:cols]               # kron(I_N, w[t]) block

        # Three accumulated MXU dots (one per tap) -> no (3*rows, L) concat traffic.
        acc = jnp.dot(w(0), a_prev, preferred_element_type=f32)
        acc = acc + jnp.dot(w(1), a, preferred_element_type=f32)
        acc = acc + jnp.dot(w(2), a_next, preferred_element_type=f32)
        rb = off[f"b{li}"]
        return acc + slab_ref[rb:rb + rows, 0:1]

    a = x_ref[...]                                            # (N, L)  (Cin = 1)
    a = jnp.maximum(conv_k3(a, 1, *CHANS[0]), 0.0)            # (N*16, L)
    a = jnp.maximum(conv_k3(a, 2, *CHANS[1]), 0.0)            # (N*8, L)
    a = jnp.maximum(conv_k3(a, 3, *CHANS[2]), 0.0)            # (N, L)

    # 1080-tap conv4 as one batched Toeplitz matmul, then sigmoid, full-block store.
    rb4 = off["b4"]
    a4 = jnp.dot(a, t4_ref[...], preferred_element_type=f32) + slab_ref[rb4:rb4 + 1, 0:1]
    o_ref[...] = pl.reciprocal(1.0 + jnp.exp(-a4), approx=False)


# ----------------------------- Wrapper (hot path) --------------------------------------


@jax.jit
def cnn_forward(x_ncl, slab, t4):
    # x_ncl: (N, 1, L) like PyTorch Conv1d input; output: (N, L) like torch.flatten(x, 1).
    x = x_ncl[:, 0, :].astype(jnp.float32)
    N, L = x.shape
    off, _rows, _cols = slab_layout(N)

    matmul_flops = 2 * L * (3 * sum(N * co * N * ci for co, ci in CHANS) + N * L)
    bytes_accessed = 4 * (x.size + slab.size + t4.size + N * L)
    cost = pl.CostEstimate(flops=int(matmul_flops),
                           transcendentals=int(N * L),
                           bytes_accessed=int(bytes_accessed))

    vmem = pl.BlockSpec(memory_space=pltpu.MemorySpace.VMEM)
    return pl.pallas_call(
        functools.partial(cnn_kernel, N=N, off=off),
        out_shape=jax.ShapeDtypeStruct((N, L), jnp.float32),
        in_specs=[vmem, vmem, vmem],
        out_specs=vmem,
        cost_estimate=cost,
    )(x, slab, t4)


# ----------------------------- Parameters & pure-JAX reference ------------------------


def make_params(key):
    ks = jax.random.split(key, 8)
    return {
        # stored as (k, C_out, C_in)
        "w1": jax.random.normal(ks[0], (3, 16, 1), jnp.float32) * 0.5,
        "b1": jax.random.normal(ks[1], (16, 1), jnp.float32) * 0.1,
        "w2": jax.random.normal(ks[2], (3, 8, 16), jnp.float32) * 0.2,
        "b2": jax.random.normal(ks[3], (8, 1), jnp.float32) * 0.1,
        "w3": jax.random.normal(ks[4], (3, 1, 8), jnp.float32) * 0.2,
        "b3": jax.random.normal(ks[5], (1, 1), jnp.float32) * 0.1,
        "w4": jax.random.normal(ks[6], (CONV4_K,), jnp.float32) * 0.02,
        "b4": jax.random.normal(ks[7], (1, 1), jnp.float32) * 0.1,
    }


def ref_forward(x_ncl, params):
    def conv1d_same(a, w_oik, b):
        k = w_oik.shape[-1]
        pad_l = (k - 1) // 2
        pad_r = k - 1 - pad_l
        out = jax.lax.conv_general_dilated(
            a, w_oik, window_strides=(1,), padding=[(pad_l, pad_r)],
            dimension_numbers=("NCH", "OIH", "NCH"))
        return out + b[None, :, None]

    a = x_ncl.astype(jnp.float32)
    a = jax.nn.relu(conv1d_same(a, jnp.transpose(params["w1"], (1, 2, 0)), params["b1"][:, 0]))
    a = jax.nn.relu(conv1d_same(a, jnp.transpose(params["w2"], (1, 2, 0)), params["b2"][:, 0]))
    a = jax.nn.relu(conv1d_same(a, jnp.transpose(params["w3"], (1, 2, 0)), params["b3"][:, 0]))
    a = conv1d_same(a, params["w4"][None, None, :], params["b4"][:, 0])
    return jax.nn.sigmoid(a[:, 0, :])


# ----------------------------- Main ---------------------------------------------------


if __name__ == "__main__":
    key = jax.random.PRNGKey(0)
    k_x, k_p = jax.random.split(key)

    N, L = 2, 256
    x = jax.random.normal(k_x, (N, 1, L), jnp.float32)   # PyTorch Conv1d layout (N, C=1, L)

    params = make_params(k_p)

    # One-time parameter preparation (NOT in the per-call hot path).
    slab, t4 = jax.block_until_ready(prepare_params(params, N, L))

    out = jax.block_until_ready(cnn_forward(x, slab, t4))
    ref = jax.block_until_ready(ref_forward(x, params))

    if not jnp.allclose(out, ref, rtol=1e-4, atol=1e-4):
        max_err = float(jnp.max(jnp.abs(out - ref)))
        raise AssertionError(f"Pallas output mismatch vs reference, max abs err = {max_err}")

    print("KERNEL_OK")
</pallas_src>

<mosaic_0001>
module attributes {stable_mosaic.version = 11 : i64} {
  func.func @cnn_kernel(%arg0: memref<2x256xf32, #tpu.memory_space<vmem>>, %arg1: memref<232x128xf32, #tpu.memory_space<vmem>>, %arg2: memref<256x256xf32, #tpu.memory_space<vmem>>, %arg3: memref<2x256xf32, #tpu.memory_space<vmem>>) attributes {dimension_semantics = [], scalar_prefetch = 0 : i64, scratch_operands = 0 : i64, tpu.core_type = #tpu.core_type<tc>} {
    %0 = tpu.iota {dimensions = array<i32: 1>} : vector<1x256xi32>
    %c0_i32 = arith.constant 0 : i32
    %1 = vector.broadcast %c0_i32 : i32 to vector<1x256xi32>
    %2 = arith.cmpi sgt, %0, %1 : vector<1x256xi32>
    %3 = arith.extui %2 : vector<1x256xi1> to vector<1x256xi32>
    %4 = arith.sitofp %3 : vector<1x256xi32> to vector<1x256xf32>
    %c255_i32 = arith.constant 255 : i32
    %5 = vector.broadcast %c255_i32 : i32 to vector<1x256xi32>
    %6 = arith.cmpi slt, %0, %5 : vector<1x256xi32>
    %7 = arith.extui %6 : vector<1x256xi1> to vector<1x256xi32>
    %8 = arith.sitofp %7 : vector<1x256xi32> to vector<1x256xf32>
    %c0 = arith.constant 0 : index
    %c0_0 = arith.constant 0 : index
    %9 = vector.load %arg0[%c0, %c0_0] : memref<2x256xf32, #tpu.memory_space<vmem>>, vector<2x256xf32>
    %c1_i32 = arith.constant 1 : i32
    %10 = tpu.dynamic_rotate %9 by %c1_i32 dim 1 : vector<2x256xf32>, i32 -> vector<2x256xf32>
    %11 = vector.broadcast %4 : vector<1x256xf32> to vector<2x256xf32>
    %12 = arith.mulf %10, %11 : vector<2x256xf32>
    %c255_i32_1 = arith.constant 255 : i32
    %13 = tpu.dynamic_rotate %9 by %c255_i32_1 dim 1 : vector<2x256xf32>, i32 -> vector<2x256xf32>
    %14 = vector.broadcast %8 : vector<1x256xf32> to vector<2x256xf32>
    %15 = arith.mulf %13, %14 : vector<2x256xf32>
    %c0_2 = arith.constant 0 : index
    %c0_3 = arith.constant 0 : index
    %16 = vector.load %arg1[%c0_2, %c0_3] : memref<232x128xf32, #tpu.memory_space<vmem>>, vector<32x2xf32>
    %cst = arith.constant dense<0.000000e+00> : vector<32x256xf32>
    %17 = tpu.matmul %16, %12, %cst {dimension_numbers = #tpu.dot_dimension_numbers<[1], [0], [0], [1], [0, 0, 1, 1], [], []>} : vector<32x2xf32>, vector<2x256xf32>, vector<32x256xf32> -> vector<32x256xf32>
    %c32 = arith.constant 32 : index
    %c0_4 = arith.constant 0 : index
    %18 = vector.load %arg1[%c32, %c0_4] : memref<232x128xf32, #tpu.memory_space<vmem>>, vector<32x2xf32>
    %cst_5 = arith.constant dense<0.000000e+00> : vector<32x256xf32>
    %19 = tpu.matmul %18, %9, %cst_5 {dimension_numbers = #tpu.dot_dimension_numbers<[1], [0], [0], [1], [0, 0, 1, 1], [], []>} : vector<32x2xf32>, vector<2x256xf32>, vector<32x256xf32> -> vector<32x256xf32>
    %20 = arith.addf %17, %19 : vector<32x256xf32>
    %c64 = arith.constant 64 : index
    %c0_6 = arith.constant 0 : index
    %21 = vector.load %arg1[%c64, %c0_6] : memref<232x128xf32, #tpu.memory_space<vmem>>, vector<32x2xf32>
    %cst_7 = arith.constant dense<0.000000e+00> : vector<32x256xf32>
    %22 = tpu.matmul %21, %15, %cst_7 {dimension_numbers = #tpu.dot_dimension_numbers<[1], [0], [0], [1], [0, 0, 1, 1], [], []>} : vector<32x2xf32>, vector<2x256xf32>, vector<32x256xf32> -> vector<32x256xf32>
    %23 = arith.addf %20, %22 : vector<32x256xf32>
    %c168 = arith.constant 168 : index
    %c0_8 = arith.constant 0 : index
    %24 = vector.load %arg1[%c168, %c0_8] : memref<232x128xf32, #tpu.memory_space<vmem>>, vector<32x1xf32>
    %25 = vector.broadcast %24 : vector<32x1xf32> to vector<32x256xf32>
    %26 = arith.addf %23, %25 : vector<32x256xf32>
    %cst_9 = arith.constant 0.000000e+00 : f32
    %27 = vector.broadcast %cst_9 : f32 to vector<32x256xf32>
    %28 = arith.maximumf %26, %27 : vector<32x256xf32>
    %c1_i32_10 = arith.constant 1 : i32
    %29 = tpu.dynamic_rotate %28 by %c1_i32_10 dim 1 : vector<32x256xf32>, i32 -> vector<32x256xf32>
    %30 = vector.broadcast %4 : vector<1x256xf32> to vector<32x256xf32>
    %31 = arith.mulf %29, %30 : vector<32x256xf32>
    %c255_i32_11 = arith.constant 255 : i32
    %32 = tpu.dynamic_rotate %28 by %c255_i32_11 dim 1 : vector<32x256xf32>, i32 -> vector<32x256xf32>
    %33 = vector.broadcast %8 : vector<1x256xf32> to vector<32x256xf32>
    %34 = arith.mulf %32, %33 : vector<32x256xf32>
    %c96 = arith.constant 96 : index
    %c0_12 = arith.constant 0 : index
    %35 = vector.load %arg1[%c96, %c0_12] : memref<232x128xf32, #tpu.memory_space<vmem>>, vector<16x32xf32>
    %cst_13 = arith.constant dense<0.000000e+00> : vector<16x256xf32>
    %36 = tpu.matmul %35, %31, %cst_13 {dimension_numbers = #tpu.dot_dimension_numbers<[1], [0], [0], [1], [0, 0, 1, 1], [], []>} : vector<16x32xf32>, vector<32x256xf32>, vector<16x256xf32> -> vector<16x256xf32>
    %c112 = arith.constant 112 : index
    %c0_14 = arith.constant 0 : index
    %37 = vector.load %arg1[%c112, %c0_14] : memref<232x128xf32, #tpu.memory_space<vmem>>, vector<16x32xf32>
    %cst_15 = arith.constant dense<0.000000e+00> : vector<16x256xf32>
    %38 = tpu.matmul %37, %28, %cst_15 {dimension_numbers = #tpu.dot_dimension_numbers<[1], [0], [0], [1], [0, 0, 1, 1], [], []>} : vector<16x32xf32>, vector<32x256xf32>, vector<16x256xf32> -> vector<16x256xf32>
    %39 = arith.addf %36, %38 : vector<16x256xf32>
    %c128 = arith.constant 128 : index
    %c0_16 = arith.constant 0 : index
    %40 = vector.load %arg1[%c128, %c0_16] : memref<232x128xf32, #tpu.memory_space<vmem>>, vector<16x32xf32>
    %cst_17 = arith.constant dense<0.000000e+00> : vector<16x256xf32>
    %41 = tpu.matmul %40, %34, %cst_17 {dimension_numbers = #tpu.dot_dimension_numbers<[1], [0], [0], [1], [0, 0, 1, 1], [], []>} : vector<16x32xf32>, vector<32x256xf32>, vector<16x256xf32> -> vector<16x256xf32>
    %42 = arith.addf %39, %41 : vector<16x256xf32>
    %c200 = arith.constant 200 : index
    %c0_18 = arith.constant 0 : index
    %43 = vector.load %arg1[%c200, %c0_18] : memref<232x128xf32, #tpu.memory_space<vmem>>, vector<16x1xf32>
    %44 = vector.broadcast %43 : vector<16x1xf32> to vector<16x256xf32>
    %45 = arith.addf %42, %44 : vector<16x256xf32>
    %cst_19 = arith.constant 0.000000e+00 : f32
    %46 = vector.broadcast %cst_19 : f32 to vector<16x256xf32>
    %47 = arith.maximumf %45, %46 : vector<16x256xf32>
    %c1_i32_20 = arith.constant 1 : i32
    %48 = tpu.dynamic_rotate %47 by %c1_i32_20 dim 1 : vector<16x256xf32>, i32 -> vector<16x256xf32>
    %49 = vector.broadcast %4 : vector<1x256xf32> to vector<16x256xf32>
    %50 = arith.mulf %48, %49 : vector<16x256xf32>
    %c255_i32_21 = arith.constant 255 : i32
    %51 = tpu.dynamic_rotate %47 by %c255_i32_21 dim 1 : vector<16x256xf32>, i32 -> vector<16x256xf32>
    %52 = vector.broadcast %8 : vector<1x256xf32> to vector<16x256xf32>
    %53 = arith.mulf %51, %52 : vector<16x256xf32>
    %c144 = arith.constant 144 : index
    %c0_22 = arith.constant 0 : index
    %54 = vector.load %arg1[%c144, %c0_22] : memref<232x128xf32, #tpu.memory_space<vmem>>, vector<2x16xf32>
    %cst_23 = arith.constant dense<0.000000e+00> : vector<2x256xf32>
    %55 = tpu.matmul %54, %50, %cst_23 {dimension_numbers = #tpu.dot_dimension_numbers<[1], [0], [0], [1], [0, 0, 1, 1], [], []>} : vector<2x16xf32>, vector<16x256xf32>, vector<2x256xf32> -> vector<2x256xf32>
    %c152 = arith.constant 152 : index
    %c0_24 = arith.constant 0 : index
    %56 = vector.load %arg1[%c152, %c0_24] : memref<232x128xf32, #tpu.memory_space<vmem>>, vector<2x16xf32>
    %cst_25 = arith.constant dense<0.000000e+00> : vector<2x256xf32>
    %57 = tpu.matmul %56, %47, %cst_25 {dimension_numbers = #tpu.dot_dimension_numbers<[1], [0], [0], [1], [0, 0, 1, 1], [], []>} : vector<2x16xf32>, vector<16x256xf32>, vector<2x256xf32> -> vector<2x256xf32>
    %58 = arith.addf %55, %57 : vector<2x256xf32>
    %c160 = arith.constant 160 : index
    %c0_26 = arith.constant 0 : index
    %59 = vector.load %arg1[%c160, %c0_26] : memref<232x128xf32, #tpu.memory_space<vmem>>, vector<2x16xf32>
    %cst_27 = arith.constant dense<0.000000e+00> : vector<2x256xf32>
    %60 = tpu.matmul %59, %53, %cst_27 {dimension_numbers = #tpu.dot_dimension_numbers<[1], [0], [0], [1], [0, 0, 1, 1], [], []>} : vector<2x16xf32>, vector<16x256xf32>, vector<2x256xf32> -> vector<2x256xf32>
    %61 = arith.addf %58, %60 : vector<2x256xf32>
    %c216 = arith.constant 216 : index
    %c0_28 = arith.constant 0 : index
    %62 = vector.load %arg1[%c216, %c0_28] : memref<232x128xf32, #tpu.memory_space<vmem>>, vector<2x1xf32>
    %63 = vector.broadcast %62 : vector<2x1xf32> to vector<2x256xf32>
    %64 = arith.addf %61, %63 : vector<2x256xf32>
    %cst_29 = arith.constant 0.000000e+00 : f32
    %65 = vector.broadcast %cst_29 : f32 to vector<2x256xf32>
    %66 = arith.maximumf %64, %65 : vector<2x256xf32>
    %c0_30 = arith.constant 0 : index
    %c0_31 = arith.constant 0 : index
    %67 = vector.load %arg2[%c0_30, %c0_31] : memref<256x256xf32, #tpu.memory_space<vmem>>, vector<256x256xf32>
    %cst_32 = arith.constant dense<0.000000e+00> : vector<2x256xf32>
    %68 = tpu.matmul %66, %67, %cst_32 {dimension_numbers = #tpu.dot_dimension_numbers<[1], [0], [0], [1], [0, 0, 1, 1], [], []>} : vector<2x256xf32>, vector<256x256xf32>, vector<2x256xf32> -> vector<2x256xf32>
    %c224 = arith.constant 224 : index
    %c0_33 = arith.constant 0 : index
    %69 = vector.load %arg1[%c224, %c0_33] : memref<232x128xf32, #tpu.memory_space<vmem>>, vector<1x1xf32>
    %70 = vector.broadcast %69 : vector<1x1xf32> to vector<2x256xf32>
    %71 = arith.addf %68, %70 : vector<2x256xf32>
    %cst_34 = arith.constant 0.000000e+00 : f32
    %72 = vector.broadcast %cst_34 : f32 to vector<2x256xf32>
    %73 = arith.subf %72, %71 : vector<2x256xf32>
    %74 = math.exp %73 : vector<2x256xf32>
    %cst_35 = arith.constant 1.000000e+00 : f32
    %75 = vector.broadcast %cst_35 : f32 to vector<2x256xf32>
    %76 = arith.addf %75, %74 : vector<2x256xf32>
    %77 = tpu.reciprocal %76 : vector<2x256xf32> -> vector<2x256xf32>
    %c0_36 = arith.constant 0 : index
    %c0_37 = arith.constant 0 : index
    %78 = vector.load %arg3[%c0_36, %c0_37] : memref<2x256xf32, #tpu.memory_space<vmem>>, vector<2x256xf32>
    tpu.vector_store %arg3[%c0_36, %c0_37], %77 {strides = array<i32>} : memref<2x256xf32, #tpu.memory_space<vmem>>, vector<2x256xf32>,
    return
  }
}

</mosaic_0001>

<bundles_post_ra>
// kernel: cnn_forward.1
= control target key start
LH: loop header
LB: loop body
LE: loop exit
PB: predicated region body
PF: predicated region fallthrough
CT: control target
= control target key end

     0   :  { %8 = vsyncpa [#allocation3], 0  ;;  %s1582_s0 = inlined_call_operand.vmem [shape: f32[2,256], index: 0, kind: input, shape index: {}]   ;;  %s1583_s1 = inlined_call_operand.hbm [shape: f32[232,128], index: 1, kind: input, shape index: {}]   ;;  %s1584_s2 = inlined_call_operand.hbm [shape: f32[256,256], index: 2, kind: input, shape index: {}]   ;;  %s1585_s3 = inlined_call_operand.hbm [shape: f32[2,256], index: 3, kind: output, shape index: {}]  }
   0x1   :  { %9 = vsyncpa [#allocation6], 0 }
   0x2   :  { %10 = vsyncpa [#allocation4], 0  ;;  %s1381_s12 = smov [#allocation2]  }
   0x3   :  { %s18_s13 = sshll.u32 %s1381_s12, 4  ;;  %s19_s13 = int_to_ptr.vmem [resolvable:$true] %s18_s13 }
   0x4   :  { %s1323_s14 = scalar_lea.vmem %s19_s13, 3712  ;;  %p1328_p1 = scmp.lt.s32.totalorder %s19_s13, %s19_s13 }
   0x5   :  { %p1324_p0 = scmp.ne.s32.totalorder %s19_s13, %s1323_s14  ;;  %p1329_p2 = scmp.lt.s32.totalorder %s1323_s14, %s1323_s14 }
   0x7   :  { %p1330_p3 = por %p1329_p2, %p1328_p1 }
   0x9   :  { %p1331_p4 = pnand %p1330_p3, %p1324_p0 }
   0xb   :  { %1334 = shalt.err (!%p1331_p4)
}
   0xc   :  { %s1382_s15 = smov 128   ;;  %s1383_s16 = smov 8  }
   0xd   :  { %24 = dma.hbm_to_vmem [thread:$0]  %s1583_s1, 3712, %s19_s13, [#allocation3], %s1382_s15, %s1382_s15, %s1383_s16  }
   0xe   :  { %s1384_s19 = smov [#allocation5]  }
   0xf   :  { %s30_s20 = sshll.u32 %s1384_s19, 4  ;;  %s31_s20 = int_to_ptr.vmem [resolvable:$true] %s30_s20 }
  0x10   :  { %s1343_s21 = scalar_lea.vmem %s31_s20, 8192  ;;  %p1348_p6 = scmp.lt.s32.totalorder %s31_s20, %s31_s20 }
  0x11   :  { %p1344_p5 = scmp.ne.s32.totalorder %s31_s20, %s1343_s21  ;;  %p1349_p7 = scmp.lt.s32.totalorder %s1343_s21, %s1343_s21 }
  0x13   :  { %p1350_p8 = por %p1349_p7, %p1348_p6 }
  0x15   :  { %p1351_p9 = pnand %p1350_p8, %p1344_p5 }
  0x17   :  { %1354 = shalt.err (!%p1351_p9)
}
  0x18   :  { %s1385_s22 = smov 256   ;;  %s1386_s23 = smov 16  }
  0x19   :  { %36 = dma.hbm_to_vmem [thread:$0]  %s1584_s2, 8192, %s31_s20, [#allocation6], %s1385_s22, %s1385_s22, %s1386_s23  }
  0x1a   :  { %1375 = dma.done.wait [#allocation3], 3712  }
  0x1b   :  { %1376 = vsyncadd [#allocation3], 4294963584 }
  0x1c   :  { %1377 = dma.done.wait [#allocation6], 8192  }
  0x1d   :  { %1378 = vsyncadd [#allocation6], 4294959104  ;;  %v1387_v0 = vmov 0.0   ;;  %vm109_vm0 = vcmask 1041408   ;;  %s1388_s27 = smov 1   ;;  %s1389_s28 = smov 127   ;;  %v43_v12 = vlaneseq }
  0x1e   :  { %178 = vmatprep.mubr.f32.mxu0 %v1387_v0  ;;  %915 = vmatprep.mubr.f32.mxu1 %v1387_v0  ;;  %v1263_v1 = vld.sshfl [vmem:[%s1582_s0] sm:$0x33 pattern:$0x76325410]  ;;  %vm96_vm1 = vcmask 15360   ;;  %v93_v4 = vld [vmem:[#allocation2 + $0x28] sm:$0xff] }
  0x1f   :  { %70 = vrot.lane.b32.xlu0 %v1263_v1, %s1388_s27  ;;  %v67_v2 = vcombine.high %v1263_v1, %v1263_v1  ;;  %79 = vrot.lane.b32.xlu1 %v1263_v1, %s1389_s28  ;;  %v92_v3 = vld [vmem:[#allocation2 + $0x20] sm:$0xff]  ;;  %v94_v5 = vld [vmem:[#allocation2 + $0x30] sm:$0xff]  ;;  %v95_v6 = vld [vmem:[#allocation2 + $0x38] sm:$0xff]  ;;  %v1390_v9 = vmov 0   ;;  %v1437_v13 = vand.u32 127, %v43_v12  ;;  %vm537_vm6 = vcmask 261120  }
  0x20   :  { %v432_v7 = vld [vmem:[#allocation2 + $0xc0] sm:$0xff]  ;;  %v431_v8 = vld [vmem:[#allocation2 + $0xb8] sm:$0xff]  ;;  %1305 = vset.pattern.permute.xlu0 %v1390_v9  ;;  %1306 = vset.pattern.permute.xlu1 %v1390_v9  ;;  %v429_v10 = vld [vmem:[#allocation2 + $0xa8] sm:$0xff]  ;;  %vm847_vm7 = vcmask 130048   ;;  %s1391_s2 = smov [#allocation7]  }
  0x21   :  { %1264 = vmatprep.subr.msk.mxu0 %vm109_vm0, %v67_v2  ;;  %v430_v11 = vld [vmem:[#allocation2 + $0xb0] sm:$0xff]  ;;  %v45_v14 = vadd.s32 128, %v1437_v13  ;;  %vm46_vm2 = vcmp.gt.s32.totalorder %v1437_v13, 0  ;;  %vm74_vm4 = vcmp.lt.s32.totalorder %v1437_v13, 1  ;;  %vm83_vm5 = vcmp.lt.s32.totalorder %v1437_v13, 127  ;;  %v88_v25 = vld [vmem:[#allocation2] sm:$0xff] }
  0x22   :  { %1265 = vmatpush1.msk.msra.mxu0 %vm109_vm0, %v1263_v1  ;;  %v1444_v17 = vsel %vm46_vm2, 1.0, %v1387_v0  ;;  %v89_v28 = vld [vmem:[#allocation2 + $0x8] sm:$0xff]  ;;  %v90_v29 = vld [vmem:[#allocation2 + $0x10] sm:$0xff]  ;;  %v91_v30 = vld [vmem:[#allocation2 + $0x18] sm:$0xff]  ;;  %s1251_s29 = sshll.u32 %s1391_s2, 4  ;;  %s1252_s29 = int_to_ptr.vmem [resolvable:$true] %s1251_s29 }
  0x23   :  { %72 = vrot.lane.b32.xlu0 %v67_v2, %s1388_s27  ;;  %81 = vrot.lane.b32.xlu1 %v67_v2, %s1389_s28  ;;  %vm53_vm3 = vcmp.lt.s32.totalorder %v45_v14, 255  ;;  %v310_v31 = vld [vmem:[#allocation2 + $0x40] sm:$0xff]  ;;  %v311_v32 = vld [vmem:[#allocation2 + $0x48] sm:$0xff]  ;;  %v312_v33 = vld [vmem:[#allocation2 + $0x50] sm:$0xff]  ;;  %s1355_s30 = scalar_lea.vmem %s1252_s29, 64  ;;  %p1360_p11 = scmp.lt.s32.totalorder %s1252_s29, %s1252_s29 }
  0x24   :  { %1266 = vmatmul.mubr.msk.f32.vlgmr.msra.gmra.mxu0 %vm96_vm1, %v92_v3  ;;  %v1447_v18 = vsel %vm53_vm3, 1.0, %v1387_v0  ;;  %v313_v34 = vld [vmem:[#allocation2 + $0x58] sm:$0xff]  ;;  %v1099_v13 = vld [vmem:[#allocation5 + $0x80] sm:$0xff]  ;;  %p1356_p10 = scmp.ne.s32.totalorder %s1252_s29, %s1355_s30  ;;  %p1361_p12 = scmp.lt.s32.totalorder %s1355_s30, %s1355_s30 }
  0x25   :  { %184 = vmatprep.mubr.f32.mxu0 %v1387_v0 }
  0x26   :  { %p1362_p13 = por %p1361_p12, %p1360_p11 }
  0x27   :  { %450 = vperm.xlu0 %1305, %v432_v7   ;;  %445 = vperm.xlu1 %1306, %v431_v8  }
  0x28   :  { %1267 = vmatmul.mubr.msk.f32.gmra.mxu0 %vm96_vm1, %v93_v4  ;;  %p1363_p0 = pnand %p1362_p13, %p1356_p10 }
  0x29   :  { %190 = vmatprep.mubr.f32.mxu0 %v1387_v0 }
  0x2b   :  { %435 = vperm.xlu0 %1305, %v429_v10   ;;  %440 = vperm.xlu1 %1306, %v430_v11  }
  0x2c   :  { %1268 = vmatmul.mubr.msk.f32.gmra.mxu0 %vm96_vm1, %v94_v5 }
  0x2d   :  { %196 = vmatprep.mubr.f32.mxu0 %v1387_v0 }
  0x30   :  { %1269 = vmatmul.mubr.msk.f32.gmra.mxu0 %vm96_vm1, %v95_v6 }
  0x31   :  { %285 = vmatprep.mubr.f32.mxu0 %v1387_v0 }
  0x91   :  { %v71_v15 = vpop.permute.xlu0 %70  ;;  %v80_v16 = vpop.permute.xlu1 %79 }
  0x95   :  { %v73_v19 = vpop.permute.xlu0 %72  ;;  %v82_v20 = vpop.permute.xlu1 %81 }
  0x96   :  { %v75_v21 = vsel %vm74_vm4, %v71_v15, %v73_v19  ;;  %v76_v22 = vsel %vm74_vm4, %v73_v19, %v71_v15  ;;  %v85_v23 = vsel %vm83_vm5, %v82_v20, %v80_v16  ;;  %v84_v27 = vsel %vm83_vm5, %v80_v16, %v82_v20 }
  0x97   :  { %v77_v24 = vmul.f32 %v1444_v17, %v76_v22  ;;  %1270 = vmatprep.subr.msk.mxu0 %vm109_vm0, %v75_v21  ;;  %v87_v26 = vmul.f32 %v1447_v18, %v85_v23 }
  0x99   :  { %1271 = vmatpush1.msk.msra.mxu0 %vm109_vm0, %v77_v24 }
  0x9a   :  { %1272 = vmatmul.mubr.msk.f32.vlgmr.msra.gmra.mxu0 %vm96_vm1, %v88_v25  ;;  %1276 = vmatprep.subr.msk.mxu0 %vm109_vm0, %v87_v26 }
  0x9b   :  { %291 = vmatprep.mubr.f32.mxu0 %v1387_v0  ;;  %1277 = vmatpush1.msk.msra.mxu0 %vm109_vm0, %v84_v27 }
  0x9e   :  { %1273 = vmatmul.mubr.msk.f32.gmra.mxu0 %vm96_vm1, %v89_v28 }
  0x9f   :  { %297 = vmatprep.mubr.f32.mxu0 %v1387_v0 }
  0xa2   :  { %1274 = vmatmul.mubr.msk.f32.gmra.mxu0 %vm96_vm1, %v90_v29  ;;  %v451_v50 = vpop.permute.xlu0 %450  ;;  %v446_v54 = vpop.permute.xlu1 %445 }
  0xa3   :  { %303 = vmatprep.mubr.f32.mxu0 %v1387_v0 }
  0xa6   :  { %1275 = vmatmul.mubr.msk.f32.gmra.mxu0 %vm96_vm1, %v91_v30  ;;  %v436_v57 = vpop.permute.xlu0 %435  ;;  %v441_v4 = vpop.permute.xlu1 %440 }
  0xa7   :  { %396 = vmatprep.mubr.f32.mxu0 %v1387_v0 }
  0xaa   :  { %1278 = vmatmul.mubr.msk.f32.vlgmr.msra.gmra.mxu0 %vm96_vm1, %v310_v31 }
  0xab   :  { %402 = vmatprep.mubr.f32.mxu0 %v1387_v0 }
  0xae   :  { %1279 = vmatmul.mubr.msk.f32.gmra.mxu0 %vm96_vm1, %v311_v32 }
  0xaf   :  { %408 = vmatprep.mubr.f32.mxu0 %v1387_v0 }
  0xb2   :  { %1280 = vmatmul.mubr.msk.f32.gmra.mxu0 %vm96_vm1, %v312_v33 }
  0xb3   :  { %414 = vmatprep.mubr.f32.mxu0 %v1387_v0 }
  0xb6   :  { %1281 = vmatmul.mubr.msk.f32.gmra.mxu0 %vm96_vm1, %v313_v34 }
  0xb7   :  { %608 = vmatprep.mubr.f32.mxu0 %v1387_v0 }
  0xe4   :  { %v180_v35 = vpop.f32.mrf.mxu0 }
  0xe6   :  { %v182_v36 = vpop.f32.mrf.mxu0 }
  0xe8   :  { %v186_v37 = vpop.f32.mrf.mxu0 }
  0xea   :  { %v188_v38 = vpop.f32.mrf.mxu0 }
  0xec   :  { %v192_v39 = vpop.f32.mrf.mxu0 }
  0xee   :  { %v194_v40 = vpop.f32.mrf.mxu0 }
  0xf0   :  { %v198_v41 = vpop.f32.mrf.mxu0 }
  0xf2   :  { %v200_v42 = vpop.f32.mrf.mxu0 }
 0x15a   :  { %v287_v43 = vpop.f32.mrf.mxu0 }
 0x15b   :  { %v288_v52 = vadd.f32 %v287_v43, %v180_v35  ;;  %v535_v35 = vld [vmem:[#allocation2 + $0x70] sm:$0xff] }
 0x15c   :  { %v289_v44 = vpop.f32.mrf.mxu0 }
 0x15d   :  { %v290_v55 = vadd.f32 %v289_v44, %v182_v36  ;;  %v536_v36 = vld [vmem:[#allocation2 + $0x78] sm:$0xff] }
 0x15e   :  { %v293_v45 = vpop.f32.mrf.mxu0 }
 0x15f   :  { %v294_v59 = vadd.f32 %v293_v45, %v186_v37  ;;  %v794_v37 = vld [vmem:[#allocation2 + $0xd0] sm:$0xff] }
 0x160   :  { %v295_v46 = vpop.f32.mrf.mxu0 }
 0x161   :  { %v296_v63 = vadd.f32 %v295_v46, %v188_v38  ;;  %v793_v38 = vld [vmem:[#allocation2 + $0xc8] sm:$0xff] }
 0x162   :  { %v299_v47 = vpop.f32.mrf.mxu0 }
 0x163   :  { %v300_v6 = vadd.f32 %v299_v47, %v192_v39 }
 0x164   :  { %v301_v48 = vpop.f32.mrf.mxu0 }
 0x165   :  { %v302_v11 = vadd.f32 %v301_v48, %v194_v40 }
 0x166   :  { %v305_v49 = vpop.f32.mrf.mxu0 }
 0x167   :  { %v306_v19 = vadd.f32 %v305_v49, %v198_v41 }
 0x168   :  { %v307_v51 = vpop.f32.mrf.mxu0 }
 0x169   :  { %v308_v24 = vadd.f32 %v307_v51, %v200_v42 }
 0x16a   :  { %v398_v53 = vpop.f32.mrf.mxu0 }
 0x16b   :  { %v421_v56 = vadd.f32 %v398_v53, %v288_v52 }
 0x16c   :  { %v400_v58 = vpop.f32.mrf.mxu0 }
 0x16d   :  { %v453_v60 = vadd.f32 %v436_v57, %v421_v56  ;;  %v422_v61 = vadd.f32 %v400_v58, %v290_v55 }
 0x16e   :  { %v404_v62 = vpop.f32.mrf.mxu0 }
 0x16f   :  { %v461_v1 = vmax.f32 %v453_v60, 0.0  ;;  %v454_v2 = vadd.f32 %v436_v57, %v422_v61  ;;  %v423_v3 = vadd.f32 %v404_v62, %v294_v59 }
 0x170   :  { %v406_v5 = vpop.f32.mrf.mxu0 }
 0x171   :  { %v462_v7 = vmax.f32 %v454_v2, 0.0  ;;  %v455_v8 = vadd.f32 %v441_v4, %v423_v3  ;;  %v424_v9 = vadd.f32 %v406_v5, %v296_v63  ;;  %469 = vrot.lane.b32.xlu1 %v461_v1, %s1388_s27  ;;  %v533_v63 = vld [vmem:[#allocation2 + $0x60] sm:$0xff] }
 0x172   :  { %v410_v10 = vpop.f32.mrf.mxu0 }
 0x173   :  { %v463_v12 = vmax.f32 %v455_v8, 0.0  ;;  %v456_v14 = vadd.f32 %v441_v4, %v424_v9  ;;  %v425_v15 = vadd.f32 %v410_v10, %v300_v6  ;;  %477 = vrot.lane.b32.xlu0 %v462_v7, %s1388_s27  ;;  %v534_v9 = vld [vmem:[#allocation2 + $0x68] sm:$0xff] }
 0x174   :  { %v412_v16 = vpop.f32.mrf.mxu0 }
 0x175   :  { %v464_v20 = vmax.f32 %v456_v14, 0.0  ;;  %v457_v21 = vadd.f32 %v446_v54, %v425_v15  ;;  %v426_v22 = vadd.f32 %v412_v16, %v302_v11  ;;  %471 = vrot.lane.b32.xlu1 %v463_v12, %s1388_s27 }
 0x176   :  { %v416_v23 = vpop.f32.mrf.mxu0 }
 0x177   :  { %v465_v25 = vmax.f32 %v457_v21, 0.0  ;;  %v458_v26 = vadd.f32 %v446_v54, %v426_v22  ;;  %v427_v27 = vadd.f32 %v416_v23, %v306_v19  ;;  %479 = vrot.lane.b32.xlu0 %v464_v20, %s1388_s27  ;;  %v705_v22 = vld [vmem:[#allocation2 + $0x88] sm:$0xff] }
 0x178   :  { %v418_v28 = vpop.f32.mrf.mxu0 }
 0x179   :  { %v466_v29 = vmax.f32 %v458_v26, 0.0  ;;  %v459_v30 = vadd.f32 %v451_v50, %v427_v27  ;;  %v428_v31 = vadd.f32 %v418_v28, %v308_v24  ;;  %473 = vrot.lane.b32.xlu1 %v465_v25, %s1388_s27 }
 0x17b   :  { %v467_v32 = vmax.f32 %v459_v30, 0.0  ;;  %v460_v33 = vadd.f32 %v451_v50, %v428_v31  ;;  %481 = vrot.lane.b32.xlu0 %v466_v29, %s1388_s27 }
 0x17d   :  { %v468_v34 = vmax.f32 %v460_v33, 0.0  ;;  %475 = vrot.lane.b32.xlu1 %v467_v32, %s1388_s27 }
 0x17f   :  { %568 = vmatprep.subr.mxu0 %v468_v34  ;;  %483 = vrot.lane.b32.xlu0 %v468_v34, %s1388_s27 }
 0x180   :  { %569 = vmatpush1.msra.mxu0 %v467_v32 }
 0x181   :  { %570 = vmatprep.subr.mxu0 %v466_v29  ;;  %505 = vrot.lane.b32.xlu1 %v465_v25, %s1389_s28 }
 0x182   :  { %571 = vmatpush1.msra.mxu0 %v465_v25 }
 0x183   :  { %572 = vmatprep.subr.mxu0 %v464_v20  ;;  %513 = vrot.lane.b32.xlu0 %v466_v29, %s1389_s28 }
 0x184   :  { %573 = vmatpush1.msra.mxu0 %v463_v12 }
 0x185   :  { %574 = vmatprep.subr.mxu0 %v462_v7  ;;  %507 = vrot.lane.b32.xlu1 %v467_v32, %s1389_s28 }
 0x186   :  { %575 = vmatpush1.msra.mxu0 %v461_v1 }
 0x187   :  { %515 = vrot.lane.b32.xlu0 %v468_v34, %s1389_s28  ;;  %1282 = vmatmul.mubr.msk.f32.vlgmr.msra.gmra.mxu0 %vm537_vm6, %v535_v35 }
 0x188   :  { %614 = vmatprep.mubr.f32.mxu0 %v1387_v0 }
 0x189   :  { %503 = vrot.lane.b32.xlu1 %v463_v12, %s1389_s28 }
 0x18b   :  { %511 = vrot.lane.b32.xlu0 %v464_v20, %s1389_s28  ;;  %1283 = vmatmul.mubr.msk.f32.gmra.mxu0 %vm537_vm6, %v536_v36  ;;  %v704_v20 = vld [vmem:[#allocation2 + $0x80] sm:$0xff] }
 0x18c   :  { %691 = vmatprep.mubr.f32.mxu0 %v1387_v0 }
 0x18d   :  { %501 = vrot.lane.b32.xlu1 %v461_v1, %s1389_s28 }
 0x18f   :  { %509 = vrot.lane.b32.xlu0 %v462_v7, %s1389_s28 }
 0x191   :  { %802 = vperm.xlu1 %1306, %v794_v37  }
 0x193   :  { %797 = vperm.xlu0 %1305, %v793_v38  }
 0x1e3   :  { %v470_v39 = vpop.permute.xlu1 %469 }
 0x1e5   :  { %v478_v40 = vpop.permute.xlu0 %477 }
 0x1e6   :  { %v489_v56 = vsel %vm74_vm4, %v478_v40, %v470_v39  ;;  %v485_v62 = vsel %vm74_vm4, %v470_v39, %v478_v40 }
 0x1e7   :  { %v472_v41 = vpop.permute.xlu1 %471  ;;  %v493_v60 = vmul.f32 %v1444_v17, %v489_v56 }
 0x1e9   :  { %v480_v42 = vpop.permute.xlu0 %479 }
 0x1ea   :  { %v490_v52 = vsel %vm74_vm4, %v480_v42, %v472_v41  ;;  %v486_v59 = vsel %vm74_vm4, %v472_v41, %v480_v42 }
 0x1eb   :  { %v474_v43 = vpop.permute.xlu1 %473  ;;  %v495_v57 = vmul.f32 %v1444_v17, %v490_v52 }
 0x1ed   :  { %v482_v44 = vpop.permute.xlu0 %481 }
 0x1ee   :  { %v491_v47 = vsel %vm74_vm4, %v482_v44, %v474_v43  ;;  %v487_v55 = vsel %vm74_vm4, %v474_v43, %v482_v44 }
 0x1ef   :  { %v476_v45 = vpop.permute.xlu1 %475  ;;  %v497_v53 = vmul.f32 %v1444_v17, %v491_v47 }
 0x1f1   :  { %v484_v46 = vpop.permute.xlu0 %483 }
 0x1f2   :  { %v492_v48 = vsel %vm74_vm4, %v484_v46, %v476_v45  ;;  %v488_v49 = vsel %vm74_vm4, %v476_v45, %v484_v46 }
 0x1f3   :  { %v499_v50 = vmul.f32 %v1444_v17, %v492_v48  ;;  %v506_v51 = vpop.permute.xlu1 %505  ;;  %651 = vmatprep.subr.mxu0 %v488_v49 }
 0x1f5   :  { %v514_v54 = vpop.permute.xlu0 %513  ;;  %652 = vmatpush1.msra.mxu0 %v499_v50 }
 0x1f6   :  { %653 = vmatprep.subr.mxu0 %v487_v55  ;;  %v523_v1 = vsel %vm83_vm5, %v514_v54, %v506_v51  ;;  %v519_v10 = vsel %vm83_vm5, %v506_v51, %v514_v54  ;;  %v1073_v54 = vld [vmem:[#allocation2 + $0xd8] sm:$0x3] }
 0x1f7   :  { %v508_v58 = vpop.permute.xlu1 %507  ;;  %654 = vmatpush1.msra.mxu0 %v497_v53  ;;  %v530_v5 = vmul.f32 %v1447_v18, %v523_v1  ;;  %v846_v53 = vld [vmem:[#allocation2 + $0x98] sm:$0x3] }
 0x1f8   :  { %655 = vmatprep.subr.mxu0 %v486_v59 }
 0x1f9   :  { %v516_v61 = vpop.permute.xlu0 %515  ;;  %656 = vmatpush1.msra.mxu0 %v495_v57 }
 0x1fa   :  { %v524_v2 = vsel %vm83_vm5, %v516_v61, %v508_v58  ;;  %657 = vmatprep.subr.mxu0 %v485_v62  ;;  %v520_v6 = vsel %vm83_vm5, %v508_v58, %v516_v61 }
 0x1fb   :  { %v532_v3 = vmul.f32 %v1447_v18, %v524_v2  ;;  %v504_v4 = vpop.permute.xlu1 %503  ;;  %658 = vmatpush1.msra.mxu0 %v493_v60 }
 0x1fc   :  { %1284 = vmatmul.mubr.msk.f32.vlgmr.msra.gmra.mxu0 %vm537_vm6, %v533_v63 }
 0x1fd   :  { %v512_v7 = vpop.permute.xlu0 %511  ;;  %736 = vmatprep.subr.mxu0 %v532_v3  ;;  %697 = vmatprep.mubr.f32.mxu0 %v1387_v0  ;;  %v845_v3 = vld [vmem:[#allocation2 + $0x90] sm:$0x3] }
 0x1fe   :  { %v522_v8 = vsel %vm83_vm5, %v512_v7, %v504_v4  ;;  %737 = vmatpush1.msra.mxu0 %v520_v6  ;;  %v518_v12 = vsel %vm83_vm5, %v504_v4, %v512_v7  ;;  %v1114_v4 = vld [vmem:[#allocation5 + $0xf8] sm:$0xff]  ;;  %v1113_v6 = vld [vmem:[#allocation5 + $0xf0] sm:$0xff] }
 0x1ff   :  { %v528_v11 = vmul.f32 %v1447_v18, %v522_v8  ;;  %738 = vmatprep.subr.mxu0 %v530_v5  ;;  %v502_v14 = vpop.permute.xlu1 %501  ;;  %v1112_v8 = vld [vmem:[#allocation5 + $0xe8] sm:$0xff] }
 0x200   :  { %739 = vmatpush1.msra.mxu0 %v519_v10 }
 0x201   :  { %v510_v15 = vpop.permute.xlu0 %509  ;;  %740 = vmatprep.subr.mxu0 %v528_v11  ;;  %1285 = vmatmul.mubr.msk.f32.gmra.mxu0 %vm537_vm6, %v534_v9 }
 0x202   :  { %v521_v16 = vsel %vm83_vm5, %v510_v15, %v502_v14  ;;  %741 = vmatpush1.msra.mxu0 %v518_v12  ;;  %776 = vmatprep.mubr.f32.mxu0 %v1387_v0  ;;  %v517_v21 = vsel %vm83_vm5, %v502_v14, %v510_v15  ;;  %v1110_v12 = vld [vmem:[#allocation5 + $0xd8] sm:$0xff]  ;;  %v1109_v15 = vld [vmem:[#allocation5 + $0xd0] sm:$0xff] }
 0x203   :  { %v526_v19 = vmul.f32 %v1447_v18, %v521_v16 }
 0x205   :  { %742 = vmatprep.subr.mxu0 %v526_v19  ;;  %v1108_v19 = vld [vmem:[#allocation5 + $0xc8] sm:$0xff] }
 0x206   :  { %743 = vmatpush1.msra.mxu0 %v517_v21  ;;  %v1107_v21 = vld [vmem:[#allocation5 + $0xc0] sm:$0xff] }
 0x207   :  { %1286 = vmatmul.mubr.msk.f32.vlgmr.msra.gmra.mxu0 %vm537_vm6, %v704_v20  ;;  %v996_v20 = vld [vmem:[#allocation2 + $0xa0] sm:$0x3] }
 0x208   :  { %782 = vmatprep.mubr.f32.mxu0 %v1387_v0 }
 0x20b   :  { %1287 = vmatmul.mubr.msk.f32.gmra.mxu0 %vm537_vm6, %v705_v22 }
 0x20c   :  { %1064 = vmatprep.mubr.f32.mxu0 %v1387_v0  ;;  %v803_v45 = vpop.permute.xlu1 %802 }
 0x20e   :  { %v798_v35 = vpop.permute.xlu0 %797 }
 0x247   :  { %v610_v23 = vpop.f32.mrf.mxu0 }
 0x249   :  { %v612_v24 = vpop.f32.mrf.mxu0 }
 0x24b   :  { %v616_v25 = vpop.f32.mrf.mxu0 }
 0x24d   :  { %v618_v26 = vpop.f32.mrf.mxu0 }
 0x2bc   :  { %v693_v27 = vpop.f32.mrf.mxu0 }
 0x2bd   :  { %v694_v31 = vadd.f32 %v693_v27, %v610_v23  ;;  %v1106_v23 = vld [vmem:[#allocation5 + $0xb8] sm:$0xff]  ;;  %v1101_v27 = vld [vmem:[#allocation5 + $0x90] sm:$0xff] }
 0x2be   :  { %v695_v28 = vpop.f32.mrf.mxu0 }
 0x2bf   :  { %v696_v33 = vadd.f32 %v695_v28, %v612_v24  ;;  %v1105_v24 = vld [vmem:[#allocation5 + $0xb0] sm:$0xff]  ;;  %v1100_v28 = vld [vmem:[#allocation5 + $0x88] sm:$0xff] }
 0x2c1   :  { %v699_v29 = vpop.f32.mrf.mxu0 }
 0x2c2   :  { %v700_v37 = vadd.f32 %v699_v29, %v616_v25  ;;  %v1104_v25 = vld [vmem:[#allocation5 + $0xa8] sm:$0xff]  ;;  %v1098_v29 = vld [vmem:[#allocation5 + $0x78] sm:$0xff] }
 0x2c3   :  { %v701_v30 = vpop.f32.mrf.mxu0 }
 0x2c4   :  { %v702_v41 = vadd.f32 %v701_v30, %v618_v26  ;;  %v1102_v26 = vld [vmem:[#allocation5 + $0x98] sm:$0xff]  ;;  %v1097_v30 = vld [vmem:[#allocation5 + $0x70] sm:$0xff] }
 0x2c7   :  { %v778_v32 = vpop.f32.mrf.mxu0 }
 0x2c8   :  { %v789_v34 = vadd.f32 %v778_v32, %v694_v31  ;;  %v1096_v31 = vld [vmem:[#allocation5 + $0x68] sm:$0xff]  ;;  %v1095_v32 = vld [vmem:[#allocation5 + $0x60] sm:$0xff] }
 0x2c9   :  { %v780_v36 = vpop.f32.mrf.mxu0 }
 0x2ca   :  { %v805_v38 = vadd.f32 %v798_v35, %v789_v34  ;;  %v790_v39 = vadd.f32 %v780_v36, %v696_v33  ;;  %v1094_v33 = vld [vmem:[#allocation5 + $0x58] sm:$0xff]  ;;  %v1093_v34 = vld [vmem:[#allocation5 + $0x50] sm:$0xff]  ;;  %v1091_v36 = vld [vmem:[#allocation5 + $0x40] sm:$0xff] }
 0x2cb   :  { %v784_v40 = vpop.f32.mrf.mxu0 }
 0x2cc   :  { %v809_v42 = vmax.f32 %v805_v38, 0.0  ;;  %v806_v43 = vadd.f32 %v798_v35, %v790_v39  ;;  %v791_v44 = vadd.f32 %v784_v40, %v700_v37  ;;  %v1092_v35 = vld [vmem:[#allocation5 + $0x48] sm:$0xff]  ;;  %v1090_v37 = vld [vmem:[#allocation5 + $0x38] sm:$0xff]  ;;  %v1089_v38 = vld [vmem:[#allocation5 + $0x30] sm:$0xff] }
 0x2cd   :  { %v786_v46 = vpop.f32.mrf.mxu0  ;;  %v1088_v39 = vld [vmem:[#allocation5 + $0x28] sm:$0xff]  ;;  %v1087_v40 = vld [vmem:[#allocation5 + $0x20] sm:$0xff] }
 0x2ce   :  { %v810_v47 = vmax.f32 %v806_v43, 0.0  ;;  %v807_v48 = vadd.f32 %v803_v45, %v791_v44  ;;  %v792_v49 = vadd.f32 %v786_v46, %v702_v41  ;;  %813 = vrot.lane.b32.xlu1 %v809_v42, %s1388_s27  ;;  %v1086_v41 = vld [vmem:[#allocation5 + $0x18] sm:$0xff]  ;;  %v1084_v43 = vld [vmem:[#allocation5 + $0x8] sm:$0xff]  ;;  %v1083_v44 = vld [vmem:[#allocation5] sm:$0xff] }
 0x2cf   :  { %v1145_v46 = vld [vmem:[#allocation5 + $0x1f0] sm:$0xff] }
 0x2d0   :  { %v811_v50 = vmax.f32 %v807_v48, 0.0  ;;  %v808_v51 = vadd.f32 %v803_v45, %v792_v49  ;;  %817 = vrot.lane.b32.xlu0 %v810_v47, %s1388_s27  ;;  %v1146_v45 = vld [vmem:[#allocation5 + $0x1f8] sm:$0xff]  ;;  %v1143_v48 = vld [vmem:[#allocation5 + $0x1e0] sm:$0xff] }
 0x2d1   :  { %v1142_v49 = vld [vmem:[#allocation5 + $0x1d8] sm:$0xff] }
 0x2d2   :  { %v812_v52 = vmax.f32 %v808_v51, 0.0  ;;  %815 = vrot.lane.b32.xlu1 %v811_v50, %s1388_s27  ;;  %v1140_v51 = vld [vmem:[#allocation5 + $0x1c8] sm:$0xff] }
 0x2d4   :  { %879 = vmatprep.subr.mxu1 %v812_v52  ;;  %819 = vrot.lane.b32.xlu0 %v812_v52, %s1388_s27 }
 0x2d5   :  { %880 = vmatpush1.msra.mxu1 %v811_v50 }
 0x2d6   :  { %881 = vmatprep.subr.mxu1 %v810_v47  ;;  %831 = vrot.lane.b32.xlu1 %v811_v50, %s1389_s28  ;;  %v1141_v50 = vld [vmem:[#allocation5 + $0x1d0] sm:$0xff] }
 0x2d7   :  { %882 = vmatpush1.msra.mxu1 %v809_v42 }
 0x2d8   :  { %835 = vrot.lane.b32.xlu0 %v812_v52, %s1389_s28  ;;  %1288 = vmatmul.mubr.msk.f32.vlgmr.msra.gmra.mxu1 %vm847_vm7, %v846_v53  ;;  %v1139_v52 = vld [vmem:[#allocation5 + $0x1c0] sm:$0xff]  ;;  %v1138_v53 = vld [vmem:[#allocation5 + $0x1b8] sm:$0xff] }
 0x2d9   :  { %989 = vmatprep.mubr.f32.mxu1 %v1387_v0 }
 0x2da   :  { %829 = vrot.lane.b32.xlu1 %v809_v42, %s1389_s28  ;;  %v1085_v42 = vld [vmem:[#allocation5 + $0x10] sm:$0xff] }
 0x2dc   :  { %833 = vrot.lane.b32.xlu0 %v810_v47, %s1389_s28  ;;  %v1144_v47 = vld [vmem:[#allocation5 + $0x1e8] sm:$0xff] }
 0x2de   :  { %1076 = vperm.xlu1 %1306, %v1073_v54   ;;  %v1137_v54 = vld [vmem:[#allocation5 + $0x1b0] sm:$0xff] }
 0x340   :  { %v814_v55 = vpop.permute.xlu1 %813 }
 0x342   :  { %v818_v56 = vpop.permute.xlu0 %817 }
 0x343   :  { %v823_v59 = vsel %vm74_vm4, %v818_v56, %v814_v55  ;;  %v821_v2 = vsel %vm74_vm4, %v814_v55, %v818_v56  ;;  %v1136_v55 = vld [vmem:[#allocation5 + $0x1a8] sm:$0xff]  ;;  %v1135_v56 = vld [vmem:[#allocation5 + $0x1a0] sm:$0xff] }
 0x344   :  { %v816_v57 = vpop.permute.xlu1 %815  ;;  %v825_v63 = vmul.f32 %v1444_v17, %v823_v59  ;;  %v1132_v59 = vld [vmem:[#allocation5 + $0x188] sm:$0xff] }
 0x346   :  { %v820_v58 = vpop.permute.xlu0 %819 }
 0x347   :  { %v824_v60 = vsel %vm74_vm4, %v820_v58, %v816_v57  ;;  %v822_v61 = vsel %vm74_vm4, %v816_v57, %v820_v58  ;;  %v1134_v57 = vld [vmem:[#allocation5 + $0x198] sm:$0xff]  ;;  %v1133_v58 = vld [vmem:[#allocation5 + $0x190] sm:$0xff] }
 0x348   :  { %v827_v0 = vmul.f32 %v1444_v17, %v824_v60  ;;  %v832_v62 = vpop.permute.xlu1 %831  ;;  %953 = vmatprep.subr.mxu1 %v822_v61  ;;  %v1111_v17 = vld [vmem:[#allocation5 + $0xe0] sm:$0xff]  ;;  %v1130_v61 = vld [vmem:[#allocation5 + $0x178] sm:$0xff] }
 0x349   :  { %v1131_v60 = vld [vmem:[#allocation5 + $0x180] sm:$0xff] }
 0x34a   :  { %v836_v1 = vpop.permute.xlu0 %835  ;;  %954 = vmatpush1.msra.mxu1 %v827_v0  ;;  %v1129_v0 = vld [vmem:[#allocation5 + $0x170] sm:$0xff] }
 0x34b   :  { %v840_v5 = vsel %vm83_vm5, %v836_v1, %v832_v62  ;;  %955 = vmatprep.subr.mxu1 %v821_v2  ;;  %v838_v9 = vsel %vm83_vm5, %v832_v62, %v836_v1  ;;  %v1128_v62 = vld [vmem:[#allocation5 + $0x168] sm:$0xff]  ;;  %v1126_v1 = vld [vmem:[#allocation5 + $0x158] sm:$0xff]  ;;  %v1125_v2 = vld [vmem:[#allocation5 + $0x150] sm:$0xff] }
 0x34c   :  { %v844_v7 = vmul.f32 %v1447_v18, %v840_v5  ;;  %956 = vmatpush1.msra.mxu1 %v825_v63  ;;  %v830_v10 = vpop.permute.xlu1 %829  ;;  %v1127_v63 = vld [vmem:[#allocation5 + $0x160] sm:$0xff]  ;;  %v1122_v5 = vld [vmem:[#allocation5 + $0x138] sm:$0xff] }
 0x34d   :  { %1289 = vmatmul.mubr.msk.f32.vlgmr.msra.gmra.mxu1 %vm847_vm7, %v845_v3  ;;  %1152 = vmatprep.subr.mxu1 %v1114_v4  ;;  %v1124_v3 = vld [vmem:[#allocation5 + $0x148] sm:$0xff]  ;;  %v1123_v4 = vld [vmem:[#allocation5 + $0x140] sm:$0xff] }
 0x34e   :  { %v834_v11 = vpop.permute.xlu0 %833  ;;  %1028 = vmatprep.subr.mxu0 %v844_v7  ;;  %1153 = vmatpush1.msra.mxu1 %v1113_v6  ;;  %v1121_v6 = vld [vmem:[#allocation5 + $0x130] sm:$0xff]  ;;  %v1120_v7 = vld [vmem:[#allocation5 + $0x128] sm:$0xff] }
 0x34f   :  { %v839_v14 = vsel %vm83_vm5, %v834_v11, %v830_v10  ;;  %1029 = vmatpush1.msra.mxu0 %v838_v9  ;;  %1154 = vmatprep.subr.mxu1 %v1112_v8  ;;  %v837_v22 = vsel %vm83_vm5, %v830_v10, %v834_v11  ;;  %v1119_v8 = vld [vmem:[#allocation5 + $0x120] sm:$0xff]  ;;  %v1117_v9 = vld [vmem:[#allocation5 + $0x110] sm:$0xff]  ;;  %v1116_v10 = vld [vmem:[#allocation5 + $0x108] sm:$0xff] }
 0x350   :  { %v842_v16 = vmul.f32 %v1447_v18, %v839_v14  ;;  %1155 = vmatpush1.msra.mxu1 %v1111_v17  ;;  %v1103_v18 = vld [vmem:[#allocation5 + $0xa0] sm:$0xff]  ;;  %v1118_v17 = vld [vmem:[#allocation5 + $0x118] sm:$0xff] }
 0x351   :  { %1156 = vmatprep.subr.mxu1 %v1110_v12  ;;  %v1115_v11 = vld [vmem:[#allocation5 + $0x100] sm:$0xff]  ;;  %v1147_v12 = vld [vmem:[#allocation2 + $0xe0] sm:$0x1] }
 0x352   :  { %1030 = vmatprep.subr.mxu0 %v842_v16  ;;  %1157 = vmatpush1.msra.mxu1 %v1109_v15  ;;  %1292 = vpush %v1147_v12 }
 0x353   :  { %1031 = vmatpush1.msra.mxu0 %v837_v22  ;;  %1158 = vmatprep.subr.mxu1 %v1108_v19 }
 0x354   :  { %1290 = vmatmul.mubr.msk.f32.vlgmr.msra.gmra.mxu0 %vm847_vm7, %v996_v20  ;;  %1159 = vmatpush1.msra.mxu1 %v1107_v21 }
 0x355   :  { %1160 = vmatprep.subr.mxu1 %v1106_v23 }
 0x356   :  { %1161 = vmatpush1.msra.mxu1 %v1105_v24 }
 0x357   :  { %1162 = vmatprep.subr.mxu1 %v1104_v25 }
 0x358   :  { %1163 = vmatpush1.msra.mxu1 %v1103_v18 }
 0x359   :  { %1164 = vmatprep.subr.mxu1 %v1102_v26  ;;  %v1077_v25 = vpop.permute.xlu1 %1076 }
 0x35a   :  { %1165 = vmatpush1.msra.mxu1 %v1101_v27 }
 0x35b   :  { %1166 = vmatprep.subr.mxu1 %v1100_v28 }
 0x35c   :  { %1167 = vmatpush1.msra.mxu1 %v1099_v13 }
 0x35d   :  { %1168 = vmatprep.subr.mxu1 %v1098_v29 }
 0x35e   :  { %1169 = vmatpush1.msra.mxu1 %v1097_v30 }
 0x35f   :  { %1170 = vmatprep.subr.mxu1 %v1096_v31 }
 0x360   :  { %1171 = vmatpush1.msra.mxu1 %v1095_v32 }
 0x361   :  { %1172 = vmatprep.subr.mxu1 %v1094_v33 }
 0x362   :  { %1173 = vmatpush1.msra.mxu1 %v1093_v34 }
 0x363   :  { %1174 = vmatprep.subr.mxu1 %v1092_v35 }
 0x364   :  { %1175 = vmatpush1.msra.mxu1 %v1091_v36 }
 0x365   :  { %1176 = vmatprep.subr.mxu1 %v1090_v37 }
 0x366   :  { %1177 = vmatpush1.msra.mxu1 %v1089_v38 }
 0x367   :  { %1178 = vmatprep.subr.mxu1 %v1088_v39 }
 0x368   :  { %1179 = vmatpush1.msra.mxu1 %v1087_v40 }
 0x369   :  { %1180 = vmatprep.subr.mxu1 %v1086_v41 }
 0x36a   :  { %1181 = vmatpush1.msra.mxu1 %v1085_v42 }
 0x36b   :  { %1182 = vmatprep.subr.mxu1 %v1084_v43 }
 0x36c   :  { %1183 = vmatpush1.msra.mxu1 %v1083_v44 }
 0x36d   :  { %1184 = vmatprep.subr.mxu1 %v1146_v45 }
 0x36e   :  { %1185 = vmatpush2.msra.mxu1 %v1145_v46 }
 0x36f   :  { %1186 = vmatprep.subr.mxu1 %v1144_v47 }
 0x370   :  { %1187 = vmatpush2.msra.mxu1 %v1143_v48 }
 0x371   :  { %1188 = vmatprep.subr.mxu1 %v1142_v49 }
 0x372   :  { %1189 = vmatpush2.msra.mxu1 %v1141_v50 }
 0x373   :  { %1190 = vmatprep.subr.mxu1 %v1140_v51 }
 0x374   :  { %1191 = vmatpush2.msra.mxu1 %v1139_v52 }
 0x375   :  { %1192 = vmatprep.subr.mxu1 %v1138_v53 }
 0x376   :  { %1193 = vmatpush2.msra.mxu1 %v1137_v54 }
 0x377   :  { %1194 = vmatprep.subr.mxu1 %v1136_v55 }
 0x378   :  { %1195 = vmatpush2.msra.mxu1 %v1135_v56 }
 0x379   :  { %1196 = vmatprep.subr.mxu1 %v1134_v57 }
 0x37a   :  { %1197 = vmatpush2.msra.mxu1 %v1133_v58 }
 0x37b   :  { %1198 = vmatprep.subr.mxu1 %v1132_v59 }
 0x37c   :  { %1199 = vmatpush2.msra.mxu1 %v1131_v60 }
 0x37d   :  { %1200 = vmatprep.subr.mxu1 %v1130_v61 }
 0x37e   :  { %1201 = vmatpush2.msra.mxu1 %v1129_v0 }
 0x37f   :  { %1202 = vmatprep.subr.mxu1 %v1128_v62 }
 0x380   :  { %1203 = vmatpush2.msra.mxu1 %v1127_v63 }
 0x381   :  { %1204 = vmatprep.subr.mxu1 %v1126_v1 }
 0x382   :  { %1205 = vmatpush2.msra.mxu1 %v1125_v2 }
 0x383   :  { %1206 = vmatprep.subr.mxu1 %v1124_v3  ;;  %s1293_s0 = spop %1292 }
 0x384   :  { %1207 = vmatpush2.msra.mxu1 %v1123_v4  ;;  %v1150_v29 = vstv %s1293_s0 }
 0x385   :  { %1208 = vmatprep.subr.mxu1 %v1122_v5 }
 0x386   :  { %1209 = vmatpush2.msra.mxu1 %v1121_v6 }
 0x387   :  { %1210 = vmatprep.subr.mxu1 %v1120_v7 }
 0x388   :  { %1211 = vmatpush2.msra.mxu1 %v1119_v8 }
 0x389   :  { %1212 = vmatprep.subr.mxu1 %v1118_v17 }
 0x38a   :  { %1213 = vmatpush2.msra.mxu1 %v1117_v9 }
 0x38b   :  { %1214 = vmatprep.subr.mxu1 %v1116_v10 }
 0x38c   :  { %1215 = vmatpush2.msra.mxu1 %v1115_v11 }
 0x398   :  { %v917_v14 = vpop.f32.mrf.mxu1 }
 0x39a   :  { %v919_v15 = vpop.f32.mrf.mxu1 }
 0x40d   :  { %v991_v16 = vpop.f32.mrf.mxu1 }
 0x40e   :  { %v992_v20 = vadd.f32 %v991_v16, %v917_v14 }
 0x40f   :  { %v993_v19 = vpop.f32.mrf.mxu1 }
 0x410   :  { %v994_v22 = vadd.f32 %v993_v19, %v919_v15 }
 0x414   :  { %v1066_v21 = vpop.f32.mrf.mxu0 }
 0x415   :  { %v1071_v23 = vadd.f32 %v1066_v21, %v992_v20 }
 0x416   :  { %v1068_v24 = vpop.f32.mrf.mxu0 }
 0x417   :  { %v1072_v18 = vadd.f32 %v1068_v24, %v994_v22  ;;  %v1079_v26 = vadd.f32 %v1077_v25, %v1071_v23 }
 0x419   :  { %v1080_v27 = vadd.f32 %v1077_v25, %v1072_v18  ;;  %v1081_v13 = vmax.f32 %v1079_v26, 0.0 }
 0x41b   :  { %v1082_v28 = vmax.f32 %v1080_v27, 0.0 }
 0x41d   :  { %1216 = vmatprep.mubr.f32.mxu1 %v1082_v28 }
 0x41e   :  { %1217 = vmatmul.mubr.f32.vlgmr.msra.gmra.mxu1 %v1081_v13 }
 0x4de   :  { %v1218_v30 = vpop.f32.mrf.mxu1 }
 0x4df   :  { %v1219_v31 = vadd.f32 %v1218_v30, %v1150_v29 }
 0x4e0   :  { %v1220_v32 = vpop.f32.mrf.mxu1 }
 0x4e1   :  { %v1223_v33 = vsub.f32 0.0, %v1219_v31  ;;  %v1221_v34 = vadd.f32 %v1220_v32, %v1150_v29 }
 0x4e3   :  { %v1225_v35 = vmul.f32 1.442695, %v1223_v33  ;;  %v1224_v36 = vsub.f32 0.0, %v1221_v34 }
 0x4e5   :  { %1307 = vpow2.f32 %v1225_v35  ;;  %v1227_v37 = vmul.f32 1.442695, %v1224_v36 }
 0x4e7   :  { %1309 = vpow2.f32 %v1227_v37 }
 0x4f2   :  { %v1308_v38 = vpop.eup %1307 }
 0x4f3   :  { %v1229_v39 = vadd.f32 1.0, %v1308_v38 }
 0x4f4   :  { %v1310_v40 = vpop.eup %1309 }
 0x4f5   :  { %v1230_v41 = vadd.f32 1.0, %v1310_v40  ;;  %1311 = vrcp.f32 %v1229_v39 }
 0x4f7   :  { %1313 = vrcp.f32 %v1230_v41 }
 0x502   :  { %v1312_v42 = vpop.eup %1311 }
 0x504   :  { %v1314_v43 = vpop.eup %1313 }
 0x505   :  { %v1235_v44 = vcombine.low %v1312_v42, %v1314_v43 }
 0x507   :  { %1291 = vst.sshfl [vmem:[#allocation7] sm:$0x33 pattern:$0x76325410] %v1235_v44 }
 0x508   :  { %1366 = shalt.err (!%p1363_p0)
}
 0x509   :  { %1254 = dma.vmem_to_hbm [thread:$0]  %s1252_s29, 64, %s1585_s3, [#allocation4]  }
 0x50a   :  { %1379 = dma.done.wait [#allocation4], 64  }
 0x50b   :  { %1380 = vsyncadd [#allocation4], 4294967232 }
 0x50c   :  { %1258 = vsyncpa [#allocation3], 1 }
 0x50d   :  { %1259 = vsyncpa [#allocation6], 1 }
 0x50e   :  { %1260 = vsyncpa [#allocation4], 1 }

</bundles_post_ra>
